<compile_context>
chip_gen: v6e
topology: v6e:2x2x1
jax: 0.10.0
libtpu: 0.0.40
codegen_flags: <defaults>
</compile_context>

<pallas_src>
import functools

import jax
import jax.numpy as jnp
from jax import lax
from jax.experimental import pallas as pl
from jax.experimental.pallas import tpu as pltpu


def _round_up(n, m):
    return ((n + m - 1) // m) * m


def two_layer_net_kernel(x_ref, w1_ref, gamma_ref, beta_ref, w2_ref, b2_ref,
                         o_ref, *, mxu_dtype):
    # fc1: [N, Din_p] @ [Din_p, Hp]  (no bias add — b1 is cancelled exactly by
    # the training-mode BatchNorm batch-mean subtraction).
    x = x_ref[...].astype(mxu_dtype)
    w1 = w1_ref[...].astype(mxu_dtype)
    h = jnp.dot(x, w1, preferred_element_type=jnp.float32)           # [N, Hp] f32

    # BatchNorm1d (training mode): per-feature batch mean, biased variance,
    # eps = 1e-5 — folded into a single per-feature scale/shift.
    mean = jnp.mean(h, axis=0, keepdims=True)                        # [1, Hp]
    centered = h - mean
    var = jnp.mean(centered * centered, axis=0, keepdims=True)       # [1, Hp]
    inv_std = lax.rsqrt(var + 1e-5)                                  # EUP
    scale = gamma_ref[...] * inv_std                                 # [1, Hp]
    shift = beta_ref[...] - mean * scale                             # [1, Hp]

    # BN + ReLU: one multiply + one add + one max over the batch-sized tensor.
    h_relu = jnp.maximum(h * scale + shift, 0.0)

    # fc2: [N, Hp] @ [Hp, Dout_p] + [1, Dout_p]
    w2 = w2_ref[...].astype(mxu_dtype)
    out = jnp.dot(h_relu.astype(mxu_dtype), w2,
                  preferred_element_type=jnp.float32) + b2_ref[...]
    o_ref[...] = out


def two_layer_net(x, w1, b1, gamma, beta, w2, b2, *, mxu_dtype=jnp.float32):
    """Fused forward pass.

    b1 is accepted for API parity with nn.Linear but never used inside the
    kernel: training-mode BatchNorm's batch-mean subtraction cancels it exactly.
    Set mxu_dtype=jnp.bfloat16 on v6e/v7x at production sizes (f32 accumulation
    is kept via preferred_element_type).
    """
    del b1
    n, d_in = x.shape
    h_dim = w1.shape[1]
    d_out = w2.shape[1]

    d_in_p = _round_up(d_in, 128)
    h_p = _round_up(h_dim, 128)
    d_out_p = _round_up(d_out, 128)

    # Lane-dense zero padding (exact): padded input columns / hidden features /
    # output columns contribute 0, and extra output columns are sliced off below.
    x_p = jnp.pad(x, ((0, 0), (0, d_in_p - d_in)))
    w1_p = jnp.pad(w1, ((0, d_in_p - d_in), (0, h_p - h_dim)))
    gamma_p = jnp.pad(gamma, ((0, 0), (0, h_p - h_dim)), constant_values=1.0)
    beta_p = jnp.pad(beta, ((0, 0), (0, h_p - h_dim)))
    w2_p = jnp.pad(w2, ((0, h_p - h_dim), (0, d_out_p - d_out)))
    b2_p = jnp.pad(b2, ((0, 0), (0, d_out_p - d_out)))

    kernel = functools.partial(two_layer_net_kernel, mxu_dtype=mxu_dtype)

    vmem = pl.BlockSpec(memory_space=pltpu.MemorySpace.VMEM)
    out_p = pl.pallas_call(
        kernel,
        out_shape=jax.ShapeDtypeStruct((n, d_out_p), jnp.float32),
        in_specs=[vmem] * 6,
        out_specs=vmem,
    )(x_p, w1_p, gamma_p, beta_p, w2_p, b2_p)

    return out_p[:, :d_out]


if __name__ == "__main__":
    # Small, deterministic shapes consistent with the module's forward:
    # x: [batch, input_size], fc1: input->hidden, fc2: hidden->output
    batch, input_size, hidden_size, output_size = 8, 32, 32, 16

    key = jax.random.PRNGKey(0)
    kx, kw1, kb1, kw2, kb2 = jax.random.split(key, 5)

    x = jax.random.normal(kx, (batch, input_size), dtype=jnp.float32)

    # Deterministic parameter init (PyTorch-like uniform fan-in scaling).
    bound1 = 1.0 / (input_size ** 0.5)
    w1 = jax.random.uniform(kw1, (input_size, hidden_size), jnp.float32,
                            -bound1, bound1)
    b1 = jax.random.uniform(kb1, (1, hidden_size), jnp.float32, -bound1, bound1)

    gamma = jnp.ones((1, hidden_size), jnp.float32)   # BatchNorm1d weight
    beta = jnp.zeros((1, hidden_size), jnp.float32)   # BatchNorm1d bias

    bound2 = 1.0 / (hidden_size ** 0.5)
    w2 = jax.random.uniform(kw2, (hidden_size, output_size), jnp.float32,
                            -bound2, bound2)
    b2 = jax.random.uniform(kb2, (1, output_size), jnp.float32, -bound2, bound2)

    out = two_layer_net(x, w1, b1, gamma, beta, w2, b2)
    jax.block_until_ready(out)
    assert out.shape == (batch, output_size)

    # Reference in plain JAX with the *full* module math (including b1) — this
    # also verifies that dropping b1 inside the kernel is exact.
    h = x @ w1 + b1
    mu = h.mean(0, keepdims=True)
    vr = ((h - mu) ** 2).mean(0, keepdims=True)
    ref = jnp.maximum((h - mu) / jnp.sqrt(vr + 1e-5) * gamma + beta, 0.0) @ w2 + b2
    assert jnp.allclose(out, ref, atol=1e-4, rtol=1e-4)

    print("KERNEL_OK")
</pallas_src>

<mosaic_0001>
module attributes {stable_mosaic.version = 11 : i64} {
  func.func @two_layer_net_kernel(%arg0: memref<8x128xf32, #tpu.memory_space<vmem>>, %arg1: memref<128x128xf32, #tpu.memory_space<vmem>>, %arg2: memref<1x128xf32, #tpu.memory_space<vmem>>, %arg3: memref<1x128xf32, #tpu.memory_space<vmem>>, %arg4: memref<128x128xf32, #tpu.memory_space<vmem>>, %arg5: memref<1x128xf32, #tpu.memory_space<vmem>>, %arg6: memref<8x128xf32, #tpu.memory_space<vmem>>) attributes {dimension_semantics = [], scalar_prefetch = 0 : i64, scratch_operands = 0 : i64, tpu.core_type = #tpu.core_type<tc>} {
    %c0 = arith.constant 0 : index
    %c0_0 = arith.constant 0 : index
    %0 = vector.load %arg0[%c0, %c0_0] : memref<8x128xf32, #tpu.memory_space<vmem>>, vector<8x128xf32>
    %c0_1 = arith.constant 0 : index
    %c0_2 = arith.constant 0 : index
    %1 = vector.load %arg1[%c0_1, %c0_2] : memref<128x128xf32, #tpu.memory_space<vmem>>, vector<128x128xf32>
    %cst = arith.constant dense<0.000000e+00> : vector<8x128xf32>
    %2 = tpu.matmul %0, %1, %cst {dimension_numbers = #tpu.dot_dimension_numbers<[1], [0], [0], [1], [0, 0, 1, 1], [], []>} : vector<8x128xf32>, vector<128x128xf32>, vector<8x128xf32> -> vector<8x128xf32>
    %cst_3 = arith.constant dense<0.000000e+00> : vector<128xf32>
    %3 = vector.multi_reduction <add>, %2, %cst_3 [0] : vector<8x128xf32> to vector<128xf32>
    %4 = vector.shape_cast %3 : vector<128xf32> to vector<1x128xf32>
    %cst_4 = arith.constant 8.000000e+00 : f32
    %5 = vector.broadcast %cst_4 : f32 to vector<1x128xf32>
    %6 = arith.divf %4, %5 : vector<1x128xf32>
    %7 = vector.broadcast %6 : vector<1x128xf32> to vector<8x128xf32>
    %8 = arith.subf %2, %7 : vector<8x128xf32>
    %9 = arith.mulf %8, %8 : vector<8x128xf32>
    %cst_5 = arith.constant dense<0.000000e+00> : vector<128xf32>
    %10 = vector.multi_reduction <add>, %9, %cst_5 [0] : vector<8x128xf32> to vector<128xf32>
    %11 = vector.shape_cast %10 : vector<128xf32> to vector<1x128xf32>
    %cst_6 = arith.constant 8.000000e+00 : f32
    %12 = vector.broadcast %cst_6 : f32 to vector<1x128xf32>
    %13 = arith.divf %11, %12 : vector<1x128xf32>
    %cst_7 = arith.constant 9.99999974E-6 : f32
    %14 = vector.broadcast %cst_7 : f32 to vector<1x128xf32>
    %15 = arith.addf %13, %14 : vector<1x128xf32>
    %16 = math.rsqrt %15 : vector<1x128xf32>
    %c0_8 = arith.constant 0 : index
    %c0_9 = arith.constant 0 : index
    %17 = vector.load %arg2[%c0_8, %c0_9] : memref<1x128xf32, #tpu.memory_space<vmem>>, vector<1x128xf32>
    %18 = arith.mulf %17, %16 : vector<1x128xf32>
    %c0_10 = arith.constant 0 : index
    %c0_11 = arith.constant 0 : index
    %19 = vector.load %arg3[%c0_10, %c0_11] : memref<1x128xf32, #tpu.memory_space<vmem>>, vector<1x128xf32>
    %20 = arith.mulf %6, %18 : vector<1x128xf32>
    %21 = arith.subf %19, %20 : vector<1x128xf32>
    %22 = vector.broadcast %18 : vector<1x128xf32> to vector<8x128xf32>
    %23 = arith.mulf %2, %22 : vector<8x128xf32>
    %24 = vector.broadcast %21 : vector<1x128xf32> to vector<8x128xf32>
    %25 = arith.addf %23, %24 : vector<8x128xf32>
    %cst_12 = arith.constant 0.000000e+00 : f32
    %26 = vector.broadcast %cst_12 : f32 to vector<8x128xf32>
    %27 = arith.maximumf %25, %26 : vector<8x128xf32>
    %c0_13 = arith.constant 0 : index
    %c0_14 = arith.constant 0 : index
    %28 = vector.load %arg4[%c0_13, %c0_14] : memref<128x128xf32, #tpu.memory_space<vmem>>, vector<128x128xf32>
    %cst_15 = arith.constant dense<0.000000e+00> : vector<8x128xf32>
    %29 = tpu.matmul %27, %28, %cst_15 {dimension_numbers = #tpu.dot_dimension_numbers<[1], [0], [0], [1], [0, 0, 1, 1], [], []>} : vector<8x128xf32>, vector<128x128xf32>, vector<8x128xf32> -> vector<8x128xf32>
    %c0_16 = arith.constant 0 : index
    %c0_17 = arith.constant 0 : index
    %30 = vector.load %arg5[%c0_16, %c0_17] : memref<1x128xf32, #tpu.memory_space<vmem>>, vector<1x128xf32>
    %31 = vector.broadcast %30 : vector<1x128xf32> to vector<8x128xf32>
    %32 = arith.addf %29, %31 : vector<8x128xf32>
    %c0_18 = arith.constant 0 : index
    %c0_19 = arith.constant 0 : index
    %33 = vector.load %arg6[%c0_18, %c0_19] : memref<8x128xf32, #tpu.memory_space<vmem>>, vector<8x128xf32>
    tpu.vector_store %arg6[%c0_18, %c0_19], %32 {strides = array<i32>} : memref<8x128xf32, #tpu.memory_space<vmem>>, vector<8x128xf32>,
    return
  }
}

</mosaic_0001>

<bundles_post_ra>
// kernel: tpu_custom_call.1
= control target key start
LH: loop header
LB: loop body
LE: loop exit
PB: predicated region body
PF: predicated region fallthrough
CT: control target
= control target key end

     0   :  { %11 = vsyncpa [#allocation3], 0  ;;  %s598_s0 = inlined_call_operand.hbm [shape: f32[8,128], index: 0, kind: input, shape index: {}]   ;;  %s599_s1 = inlined_call_operand.hbm [shape: f32[128,128], index: 1, kind: input, shape index: {}]   ;;  %s600_s2 = inlined_call_operand.vmem [shape: f32[1,128], index: 2, kind: input, shape index: {}]   ;;  %s601_s3 = inlined_call_operand.vmem [shape: f32[1,128], index: 3, kind: input, shape index: {}]   ;;  %s602_s4 = inlined_call_operand.hbm [shape: f32[128,128], index: 4, kind: input, shape index: {}]   ;;  %s603_s5 = inlined_call_operand.vmem [shape: f32[1,128], index: 5, kind: input, shape index: {}]   ;;  %s604_s6 = inlined_call_operand.hbm [shape: f32[8,128], index: 6, kind: output, shape index: {}]  }
   0x1   :  { %12 = vsyncpa [#allocation6], 0 }
   0x2   :  { %13 = vsyncpa [#allocation4], 0  ;;  %s500_s21 = smov [#allocation5]  }
   0x3   :  { %s29_s22 = sshll.u32 %s500_s21, 4  ;;  %s30_s22 = int_to_ptr.vmem [resolvable:$true] %s29_s22 }
   0x4   :  { %s422_s23 = scalar_lea.vmem %s30_s22, 2048  ;;  %p427_p1 = scmp.lt.s32.totalorder %s30_s22, %s30_s22 }
   0x5   :  { %p423_p0 = scmp.ne.s32.totalorder %s30_s22, %s422_s23  ;;  %p428_p2 = scmp.lt.s32.totalorder %s422_s23, %s422_s23 }
   0x7   :  { %p429_p3 = por %p428_p2, %p427_p1 }
   0x9   :  { %p430_p4 = pnand %p429_p3, %p423_p0 }
   0xb   :  { %433 = shalt.err (!%p430_p4)
}
   0xc   :  { %s501_s24 = smov 128   ;;  %s502_s25 = smov 8  }
   0xd   :  { %35 = dma.hbm_to_vmem [thread:$0]  %s599_s1, 2048, %s30_s22, [#allocation6], %s501_s24, %s501_s24, %s502_s25  }
   0xe   :  { %s503_s28 = smov [#allocation2]   ;;  %s504_s30 = smov [#allocation7]  }
   0xf   :  { %s20_s29 = sshll.u32 %s503_s28, 4  ;;  %s45_s7 = sshll.u32 %s504_s30, 4  ;;  %s21_s29 = int_to_ptr.vmem [resolvable:$true] %s20_s29  ;;  %s46_s7 = int_to_ptr.vmem [resolvable:$true] %s45_s7 }
  0x10   :  { %s442_s8 = scalar_lea.vmem %s21_s29, 128  ;;  %p447_p6 = scmp.lt.s32.totalorder %s21_s29, %s21_s29 }
  0x11   :  { %p443_p5 = scmp.ne.s32.totalorder %s21_s29, %s442_s8  ;;  %p448_p7 = scmp.lt.s32.totalorder %s442_s8, %s442_s8 }
  0x13   :  { %p449_p8 = por %p448_p7, %p447_p6 }
  0x15   :  { %p450_p9 = pnand %p449_p8, %p443_p5 }
  0x17   :  { %453 = shalt.err (!%p450_p9)
}
  0x18   :  { %23 = dma.hbm_to_vmem [thread:$0]  %s598_s0, 128, %s21_s29, [#allocation3]  }
  0x19   :  { %s462_s11 = scalar_lea.vmem %s46_s7, 2048  ;;  %p467_p11 = scmp.lt.s32.totalorder %s46_s7, %s46_s7 }
  0x1a   :  { %p463_p10 = scmp.ne.s32.totalorder %s46_s7, %s462_s11  ;;  %p468_p12 = scmp.lt.s32.totalorder %s462_s11, %s462_s11 }
  0x1c   :  { %p469_p13 = por %p468_p12, %p467_p11 }
  0x1e   :  { %p470_p0 = pnand %p469_p13, %p463_p10 }
  0x20   :  { %473 = shalt.err (!%p470_p0)
}
  0x21   :  { %51 = dma.hbm_to_vmem [thread:$0]  %s602_s4, 2048, %s46_s7, [#allocation6], %s501_s24, %s501_s24, %s502_s25  }
  0x22   :  { %494 = dma.done.wait [#allocation3], 128  }
  0x23   :  { %495 = vsyncadd [#allocation3], 4294967168 }
  0x24   :  { %496 = dma.done.wait [#allocation6], 4096  }
  0x25   :  { %497 = vsyncadd [#allocation6], 4294963200  ;;  %v505_v0 = vmov 0.0   ;;  %vm506_vm0 = vmmov 0   ;;  %v79_v1 = vld [vmem:[#allocation5 + $0x78] sm:$0xff]  ;;  %v78_v2 = vld [vmem:[#allocation5 + $0x70] sm:$0xff]  ;;  %v175_v53 = vlaneseq }
  0x26   :  { %334 = vmatprep.subr.mxu0 %v505_v0  ;;  %366 = vmatprep.mubr.msk.f32.mxu0 %vm506_vm0, %v505_v0  ;;  %v77_v3 = vld [vmem:[#allocation5 + $0x68] sm:$0xff]  ;;  %v76_v4 = vld [vmem:[#allocation5 + $0x60] sm:$0xff]  ;;  %v75_v5 = vld [vmem:[#allocation5 + $0x58] sm:$0xff] }
  0x27   :  { %369 = vmatprep.subr.mxu1 %v505_v0  ;;  %401 = vmatprep.mubr.msk.f32.mxu1 %vm506_vm0, %v505_v0  ;;  %v74_v6 = vld [vmem:[#allocation5 + $0x50] sm:$0xff]  ;;  %v73_v7 = vld [vmem:[#allocation5 + $0x48] sm:$0xff]  ;;  %v72_v8 = vld [vmem:[#allocation5 + $0x40] sm:$0xff]  ;;  %v176_v54 = vshrl.u32 %v175_v53, 7 }
  0x28   :  { %335 = vmatpush3.msra.mxu0 %v79_v1  ;;  %v71_v9 = vld [vmem:[#allocation5 + $0x38] sm:$0xff]  ;;  %v70_v10 = vld [vmem:[#allocation5 + $0x30] sm:$0xff]  ;;  %v69_v11 = vld [vmem:[#allocation5 + $0x28] sm:$0xff] }
  0x29   :  { %336 = vmatprep.subr.mxu0 %v505_v0  ;;  %v68_v12 = vld [vmem:[#allocation5 + $0x20] sm:$0xff]  ;;  %v67_v13 = vld [vmem:[#allocation5 + $0x18] sm:$0xff]  ;;  %v66_v14 = vld [vmem:[#allocation5 + $0x10] sm:$0xff]  ;;  %v177_v56 = vsub.s32 0, %v176_v54 }
  0x2a   :  { %337 = vmatpush3.msra.mxu0 %v78_v2  ;;  %v65_v15 = vld [vmem:[#allocation5 + $0x8] sm:$0xff]  ;;  %v64_v16 = vld [vmem:[#allocation5] sm:$0xff]  ;;  %v63_v17 = vld [vmem:[#allocation2] sm:$0xff] }
  0x2b   :  { %338 = vmatprep.subr.mxu0 %v505_v0  ;;  %v204_v18 = vld [vmem:[#allocation7 + $0x78] sm:$0xff]  ;;  %v203_v19 = vld [vmem:[#allocation7 + $0x70] sm:$0xff]  ;;  %v202_v20 = vld [vmem:[#allocation7 + $0x68] sm:$0xff] }
  0x2c   :  { %339 = vmatpush3.msra.mxu0 %v77_v3  ;;  %370 = vmatpush3.msra.mxu1 %v204_v18  ;;  %v201_v21 = vld [vmem:[#allocation7 + $0x60] sm:$0xff]  ;;  %v200_v22 = vld [vmem:[#allocation7 + $0x58] sm:$0xff]  ;;  %v199_v23 = vld [vmem:[#allocation7 + $0x50] sm:$0xff] }
  0x2d   :  { %340 = vmatprep.subr.mxu0 %v505_v0  ;;  %371 = vmatprep.subr.mxu1 %v505_v0  ;;  %v198_v24 = vld [vmem:[#allocation7 + $0x48] sm:$0xff]  ;;  %v197_v25 = vld [vmem:[#allocation7 + $0x40] sm:$0xff]  ;;  %v196_v26 = vld [vmem:[#allocation7 + $0x38] sm:$0xff] }
  0x2e   :  { %341 = vmatpush3.msra.mxu0 %v76_v4  ;;  %372 = vmatpush3.msra.mxu1 %v203_v19  ;;  %v195_v27 = vld [vmem:[#allocation7 + $0x30] sm:$0xff]  ;;  %v194_v28 = vld [vmem:[#allocation7 + $0x28] sm:$0xff]  ;;  %v193_v29 = vld [vmem:[#allocation7 + $0x20] sm:$0xff] }
  0x2f   :  { %342 = vmatprep.subr.mxu0 %v505_v0  ;;  %373 = vmatprep.subr.mxu1 %v505_v0  ;;  %v192_v30 = vld [vmem:[#allocation7 + $0x18] sm:$0xff]  ;;  %v191_v31 = vld [vmem:[#allocation7 + $0x10] sm:$0xff]  ;;  %v190_v32 = vld [vmem:[#allocation7 + $0x8] sm:$0xff] }
  0x30   :  { %343 = vmatpush3.msra.mxu0 %v75_v5  ;;  %374 = vmatpush3.msra.mxu1 %v202_v20  ;;  %v189_v33 = vld [vmem:[#allocation7] sm:$0xff]  ;;  %v169_v55 = vld [vmem:[%s600_s2] sm:$0x1]  ;;  %s507_s2 = smov [#allocation8]  }
  0x31   :  { %344 = vmatprep.subr.mxu0 %v505_v0  ;;  %375 = vmatprep.subr.mxu1 %v505_v0  ;;  %v171_v59 = vld [vmem:[%s601_s3] sm:$0x1]  ;;  %s289_s17 = sshll.u32 %s507_s2, 4  ;;  %s290_s17 = int_to_ptr.vmem [resolvable:$true] %s289_s17 }
  0x32   :  { %345 = vmatpush3.msra.mxu0 %v74_v6  ;;  %376 = vmatpush3.msra.mxu1 %v201_v21  ;;  %v299_v3 = vld [vmem:[%s603_s5] ss:$0 sm:$0xff]  ;;  %s474_s3 = scalar_lea.vmem %s290_s17, 128  ;;  %p479_p2 = scmp.lt.s32.totalorder %s290_s17, %s290_s17 }
  0x33   :  { %346 = vmatprep.subr.mxu0 %v505_v0  ;;  %377 = vmatprep.subr.mxu1 %v505_v0  ;;  %p475_p1 = scmp.ne.s32.totalorder %s290_s17, %s474_s3  ;;  %p480_p3 = scmp.lt.s32.totalorder %s474_s3, %s474_s3 }
  0x34   :  { %347 = vmatpush3.msra.mxu0 %v73_v7  ;;  %378 = vmatpush3.msra.mxu1 %v200_v22 }
  0x35   :  { %348 = vmatprep.subr.mxu0 %v505_v0  ;;  %379 = vmatprep.subr.mxu1 %v505_v0  ;;  %p481_p4 = por %p480_p3, %p479_p2 }
  0x36   :  { %349 = vmatpush3.msra.mxu0 %v72_v8  ;;  %380 = vmatpush3.msra.mxu1 %v199_v23 }
  0x37   :  { %350 = vmatprep.subr.mxu0 %v505_v0  ;;  %381 = vmatprep.subr.mxu1 %v505_v0  ;;  %p482_p5 = pnand %p481_p4, %p475_p1 }
  0x38   :  { %351 = vmatpush3.msra.mxu0 %v71_v9  ;;  %382 = vmatpush3.msra.mxu1 %v198_v24 }
  0x39   :  { %352 = vmatprep.subr.mxu0 %v505_v0  ;;  %383 = vmatprep.subr.mxu1 %v505_v0 }
  0x3a   :  { %353 = vmatpush3.msra.mxu0 %v70_v10  ;;  %384 = vmatpush3.msra.mxu1 %v197_v25 }
  0x3b   :  { %354 = vmatprep.subr.mxu0 %v505_v0  ;;  %385 = vmatprep.subr.mxu1 %v505_v0 }
  0x3c   :  { %355 = vmatpush3.msra.mxu0 %v69_v11  ;;  %386 = vmatpush3.msra.mxu1 %v196_v26 }
  0x3d   :  { %356 = vmatprep.subr.mxu0 %v505_v0  ;;  %387 = vmatprep.subr.mxu1 %v505_v0 }
  0x3e   :  { %357 = vmatpush3.msra.mxu0 %v68_v12  ;;  %388 = vmatpush3.msra.mxu1 %v195_v27 }
  0x3f   :  { %358 = vmatprep.subr.mxu0 %v505_v0  ;;  %389 = vmatprep.subr.mxu1 %v505_v0 }
  0x40   :  { %359 = vmatpush3.msra.mxu0 %v67_v13  ;;  %390 = vmatpush3.msra.mxu1 %v194_v28 }
  0x41   :  { %360 = vmatprep.subr.mxu0 %v505_v0  ;;  %391 = vmatprep.subr.mxu1 %v505_v0 }
  0x42   :  { %361 = vmatpush3.msra.mxu0 %v66_v14  ;;  %392 = vmatpush3.msra.mxu1 %v193_v29 }
  0x43   :  { %362 = vmatprep.subr.mxu0 %v505_v0  ;;  %393 = vmatprep.subr.mxu1 %v505_v0 }
  0x44   :  { %363 = vmatpush3.msra.mxu0 %v65_v15  ;;  %394 = vmatpush3.msra.mxu1 %v192_v30 }
  0x45   :  { %364 = vmatprep.subr.mxu0 %v505_v0  ;;  %395 = vmatprep.subr.mxu1 %v505_v0 }
  0x46   :  { %365 = vmatpush3.msra.mxu0 %v64_v16  ;;  %396 = vmatpush3.msra.mxu1 %v191_v31 }
  0x47   :  { %367 = vmatmul.mubr.f32.vlgmr.msra.gmra.mxu0 %v63_v17  ;;  %397 = vmatprep.subr.mxu1 %v505_v0 }
  0x48   :  { %398 = vmatpush3.msra.mxu1 %v190_v32 }
  0x49   :  { %399 = vmatprep.subr.mxu1 %v505_v0 }
  0x4a   :  { %400 = vmatpush3.msra.mxu1 %v189_v33 }
 0x107   :  { %v146_v34 = vpop.f32.mrf.mxu0 }
 0x108   :  { %v150_v35 = vrot.slane %v146_v34, 4 }
 0x109   :  { %v368_v36 = vpop.f32.mrf.mxu0 }
 0x10a   :  { %v151_v37 = vadd.f32 %v150_v35, %v146_v34 }
 0x10c   :  { %v152_v38 = vrot.slane %v151_v37, 2 }
 0x10e   :  { %v153_v39 = vadd.f32 %v152_v38, %v151_v37 }
 0x110   :  { %v154_v40 = vrot.slane %v153_v39, 1 }
 0x112   :  { %v155_v41 = vadd.f32 %v154_v40, %v153_v39 }
 0x114   :  { %v157_v42 = vmul.f32 0.125, %v155_v41 }
 0x116   :  { %v158_v43 = vsub.f32 %v146_v34, %v157_v42 }
 0x118   :  { %v159_v44 = vmul.f32 %v158_v43, %v158_v43 }
 0x11a   :  { %v160_v45 = vrot.slane %v159_v44, 4 }
 0x11c   :  { %v161_v46 = vadd.f32 %v160_v45, %v159_v44 }
 0x11e   :  { %v162_v47 = vrot.slane %v161_v46, 2 }
 0x120   :  { %v163_v48 = vadd.f32 %v162_v47, %v161_v46 }
 0x122   :  { %v164_v49 = vrot.slane %v163_v48, 1 }
 0x124   :  { %v165_v50 = vadd.f32 %v164_v49, %v163_v48 }
 0x126   :  { %v166_v51 = vmul.f32 0.125, %v165_v50 }
 0x128   :  { %v167_v52 = vadd.f32 1e-05, %v166_v51 }
 0x12a   :  { %412 = vrsqrt.f32 %v167_v52 }
 0x137   :  { %v413_v57 = vpop.eup %412 }
 0x138   :  { %v170_v58 = vmul.f32 %v413_v57, %v169_v55 }
 0x13a   :  { %v172_v60 = vmul.f32 %v170_v58, %v157_v42  ;;  %v178_v61 = vrot.slane %v170_v58, %v177_v56 }
 0x13c   :  { %v173_v62 = vsub.f32 %v171_v59, %v172_v60  ;;  %v180_v63 = vmul.f32 %v178_v61, %v146_v34 }
 0x13e   :  { %v185_v0 = vrot.slane %v173_v62, %v177_v56 }
 0x140   :  { %v187_v1 = vadd.f32 %v185_v0, %v180_v63 }
 0x142   :  { %v188_v2 = vmax.f32 %v187_v1, 0.0 }
 0x144   :  { %402 = vmatmul.mubr.f32.vlgmr.msra.gmra.mxu1 %v188_v2 }
 0x204   :  { %v278_v4 = vpop.f32.mrf.mxu1 }
 0x205   :  { %v279_v5 = vadd.f32 %v299_v3, %v278_v4 }
 0x206   :  { %v403_v6 = vpop.f32.mrf.mxu1 }
 0x207   :  { %282 = vst [vmem:[#allocation8] sm:$0xff] %v279_v5 }
 0x208   :  { %485 = shalt.err (!%p482_p5)
}
 0x209   :  { %292 = dma.vmem_to_hbm [thread:$0]  %s290_s17, 128, %s604_s6, [#allocation4]  }
 0x20a   :  { %498 = dma.done.wait [#allocation4], 128  }
 0x20b   :  { %499 = vsyncadd [#allocation4], 4294967168 }
 0x20c   :  { %296 = vsyncpa [#allocation3], 1 }
 0x20d   :  { %297 = vsyncpa [#allocation6], 1 }
 0x20e   :  { %298 = vsyncpa [#allocation4], 1 }

</bundles_post_ra>
